<compile_context>
chip_gen: v7x
topology: tpu7x:2x2x1
jax: 0.10.0
libtpu: 0.0.40
codegen_flags: <defaults>
</compile_context>

<pallas_src>
import functools

import jax
import jax.numpy as jnp
from jax import lax
from jax.experimental import pallas as pl
from jax.experimental.pallas import tpu as pltpu


# ---------------------------------------------------------------------------
# Row-shift helper: value of v at row (l + d) within the same length-L
# sequence; rows whose neighbour falls outside the sequence get `fill`.
# The block always holds a whole number of length-L sequences, so a circular
# roll + iota edge-mask is exact (wrap-around rows are always masked).
# ---------------------------------------------------------------------------
def _tap(v, d, L, fill):
    if d == 0:
        return v
    pos = lax.broadcasted_iota(jnp.int32, v.shape, 0) % L
    rolled = jnp.roll(v, -d, axis=0)          # row l now holds v[l + d] (circular)
    if d > 0:
        mask = pos >= (L - d)
    else:
        mask = pos < (-d)
    return jnp.where(mask, fill, rolled)


# ---------------------------------------------------------------------------
# Pallas kernel: the whole inception block in two fused matmuls per block.
# ---------------------------------------------------------------------------
def inception_kernel(x_ref, wa_ref, sa_ref, ha_ref, wb_ref, sb_ref, hb_ref,
                     out_ref, *, L, o3r, compute_dtype):
    f32 = jnp.float32
    x = x_ref[...].astype(f32)                                    # (R, C_in)

    # ---- stage 1: fused 1x1 reduce convs (branch 2 & 3) -> BN -> ReLU ----
    r = jnp.dot(x.astype(compute_dtype), wa_ref[...],
                preferred_element_type=f32)
    r = jnp.maximum(r * sa_ref[...] + ha_ref[...], 0.0)           # (R, o3r+o5r)
    r2 = r[:, :o3r]                                               # (R, o3r)
    r3 = r[:, o3r:]                                               # (R, o5r)

    # ---- branch 4: maxpool(3, stride 1, pad 1) computed in-kernel --------
    # Missing neighbours are replaced by x itself (== PyTorch's -inf pad).
    pooled = jnp.maximum(jnp.maximum(x, _tap(x, -1, L, x)), _tap(x, 1, L, x))

    # ---- stage 2: one block-structured matmul -> [y1 | y2 | y3 | y4] -----
    acts = jnp.concatenate(
        [x,                                                        # branch 1
         _tap(r2, -1, L, 0.0), r2, _tap(r2, 1, L, 0.0),            # 3 taps
         _tap(r3, -2, L, 0.0), _tap(r3, -1, L, 0.0), r3,
         _tap(r3, 1, L, 0.0), _tap(r3, 2, L, 0.0),                 # 5 taps
         pooled],                                                  # branch 4
        axis=-1)                                                   # (R, K2)
    z = jnp.dot(acts.astype(compute_dtype), wb_ref[...],
                preferred_element_type=f32)                        # (R, c_pad)
    out_ref[...] = jnp.maximum(z * sb_ref[...] + hb_ref[...],
                               0.0).astype(out_ref.dtype)


# ---------------------------------------------------------------------------
# Row-block selection: whole sequences per block, sublane aligned.
# ---------------------------------------------------------------------------
def _rows_per_block(B, L, target=512):
    total = B * L
    if total <= target:
        return total
    for nseq in range(1, B + 1):
        if B % nseq:
            continue
        rows = nseq * L
        if rows % 8:
            continue
        if rows >= target:
            return rows
    return total


# ---------------------------------------------------------------------------
# Wrapper: parameter folding / fusion, layout conversion, pallas_call.
# ---------------------------------------------------------------------------
def inception_forward(x_ncl, params, *, compute_dtype=jnp.float32,
                      target_block_rows=512):
    B, C_in, L = x_ncl.shape
    eps = 1e-5

    # NCL -> (B*L, C_in): channels on lanes, (batch*length) on sublanes.
    x = jnp.transpose(x_ncl, (0, 2, 1)).reshape(B * L, C_in).astype(jnp.float32)

    p1, p2a, p2b = params['b1'], params['b2a'], params['b2b']
    p3a, p3b, p4 = params['b3a'], params['b3b'], params['b4']

    def w1x1(p):                      # (out, in, 1) -> (in, out)
        return jnp.transpose(p['w'][:, :, 0], (1, 0)).astype(compute_dtype)

    def wk(p):                        # (out, in, K) -> (K, in, out)
        return jnp.transpose(p['w'], (2, 1, 0)).astype(compute_dtype)

    def fold_bn(p):                   # BN (inference) + conv bias folding
        scale = p['gamma'] / jnp.sqrt(p['var'] + eps)
        shift = p['beta'] + (p['b'] - p['mean']) * scale
        return scale, shift

    s1, h1 = fold_bn(p1)
    s2a, h2a = fold_bn(p2a)
    s2b, h2b = fold_bn(p2b)
    s3a, h3a = fold_bn(p3a)
    s3b, h3b = fold_bn(p3b)
    s4, h4 = fold_bn(p4)

    o1 = p1['w'].shape[0]
    o3r, o3 = p2b['w'].shape[1], p2b['w'].shape[0]
    o5r, o5 = p3b['w'].shape[1], p3b['w'].shape[0]
    op = p4['w'].shape[0]
    c_total = o1 + o3 + o5 + op
    c_pad = 128 * pl.cdiv(c_total, 128)        # lane-dense output store

    # ---- fused stage-1 weight / scale / shift:  x @ [w2a | w3a] ----------
    wa = jnp.concatenate([w1x1(p2a), w1x1(p3a)], axis=1)       # (C_in, o3r+o5r)
    sa = jnp.concatenate([s2a, s3a])[None, :]
    ha = jnp.concatenate([h2a, h3a])[None, :]

    # ---- fused stage-2 block-structured weight ----------------------------
    # Rows: [x | 3 shifted r2 copies | 5 shifted r3 copies | pooled x]
    # Cols: [y1 | y2 | y3 | y4 | zero padding to c_pad]
    K2 = 2 * C_in + 3 * o3r + 5 * o5r
    wb = jnp.zeros((K2, c_pad), compute_dtype)
    row = 0
    wb = wb.at[row:row + C_in, 0:o1].set(w1x1(p1)); row += C_in
    w2b = wk(p2b)                                              # (3, o3r, o3)
    for k in range(3):
        wb = wb.at[row:row + o3r, o1:o1 + o3].set(w2b[k]); row += o3r
    w3b = wk(p3b)                                              # (5, o5r, o5)
    for k in range(5):
        wb = wb.at[row:row + o5r, o1 + o3:o1 + o3 + o5].set(w3b[k]); row += o5r
    wb = wb.at[row:row + C_in, o1 + o3 + o5:c_total].set(w1x1(p4)); row += C_in
    assert row == K2

    sb = jnp.zeros((c_pad,), jnp.float32).at[:c_total].set(
        jnp.concatenate([s1, s2b, s3b, s4]))[None, :]
    hb = jnp.zeros((c_pad,), jnp.float32).at[:c_total].set(
        jnp.concatenate([h1, h2b, h3b, h4]))[None, :]

    # ---- grid: blocks of whole sequences ----------------------------------
    total_rows = B * L
    rows_blk = _rows_per_block(B, L, target_block_rows)
    n_blocks = total_rows // rows_blk

    kernel = functools.partial(inception_kernel, L=L, o3r=o3r,
                               compute_dtype=compute_dtype)

    const_inputs = (wa, sa, ha, wb, sb, hb)

    def const_spec(a):
        return pl.BlockSpec(a.shape, lambda i, n=a.ndim: (0,) * n)

    flops = 2 * total_rows * (C_in * (o3r + o5r) + K2 * c_pad)
    bytes_accessed = (int(x.size) * 4 + total_rows * c_pad * 4
                      + sum(int(a.size) * a.dtype.itemsize for a in const_inputs))
    cost = pl.CostEstimate(flops=flops, transcendentals=0,
                           bytes_accessed=bytes_accessed)

    out = pl.pallas_call(
        kernel,
        out_shape=jax.ShapeDtypeStruct((total_rows, c_pad), jnp.float32),
        grid_spec=pltpu.PrefetchScalarGridSpec(
            num_scalar_prefetch=0,
            grid=(n_blocks,),
            in_specs=[pl.BlockSpec((rows_blk, C_in), lambda i: (i, 0))]
                     + [const_spec(a) for a in const_inputs],
            out_specs=pl.BlockSpec((rows_blk, c_pad), lambda i: (i, 0))),
        compiler_params=pltpu.CompilerParams(
            dimension_semantics=("parallel",)),
        cost_estimate=cost,
    )(x, *const_inputs)

    out = out[:, :c_total].reshape(B, L, c_total)
    return jnp.transpose(out, (0, 2, 1))                       # -> (B, C, L)


# ---------------------------------------------------------------------------
# Pure-JAX reference (same math, standard ops) for the correctness check.
# ---------------------------------------------------------------------------
def ref_forward(x_ncl, params, eps=1e-5):
    x = jnp.transpose(x_ncl, (0, 2, 1)).astype(jnp.float32)    # (B, L, C)
    L = x.shape[1]

    def conv(a, p, pad):
        w, b = p['w'], p['b']
        K = w.shape[2]
        ap = jnp.pad(a, ((0, 0), (pad, pad), (0, 0)))
        out = sum(jnp.einsum('blc,oc->blo', ap[:, k:k + L], w[:, :, k])
                  for k in range(K))
        return out + b

    def bn_relu(a, p):
        a = (a - p['mean']) / jnp.sqrt(p['var'] + eps) * p['gamma'] + p['beta']
        return jnp.maximum(a, 0.0)

    y1 = bn_relu(conv(x, params['b1'], 0), params['b1'])
    y2 = bn_relu(conv(bn_relu(conv(x, params['b2a'], 0), params['b2a']),
                      params['b2b'], 1), params['b2b'])
    y3 = bn_relu(conv(bn_relu(conv(x, params['b3a'], 0), params['b3a']),
                      params['b3b'], 2), params['b3b'])
    xp = jnp.pad(x, ((0, 0), (1, 1), (0, 0)), constant_values=-jnp.inf)
    pooled = jnp.maximum(jnp.maximum(xp[:, 0:L], xp[:, 1:L + 1]), xp[:, 2:L + 2])
    y4 = bn_relu(conv(pooled, params['b4'], 0), params['b4'])

    return jnp.transpose(jnp.concatenate([y1, y2, y3, y4], axis=-1), (0, 2, 1))


# ---------------------------------------------------------------------------
# Deterministic parameter construction.
# ---------------------------------------------------------------------------
def make_conv_bn(key, c_in, c_out, k):
    ks = jax.random.split(key, 6)
    return dict(
        w=jax.random.normal(ks[0], (c_out, c_in, k), jnp.float32) * 0.1,
        b=jax.random.normal(ks[1], (c_out,), jnp.float32) * 0.1,
        gamma=jax.random.uniform(ks[2], (c_out,), jnp.float32, 0.5, 1.5),
        beta=jax.random.normal(ks[3], (c_out,), jnp.float32) * 0.1,
        mean=jax.random.normal(ks[4], (c_out,), jnp.float32) * 0.1,
        var=jax.random.uniform(ks[5], (c_out,), jnp.float32, 0.5, 1.5),
    )


if __name__ == "__main__":
    key = jax.random.PRNGKey(0)
    B, C_in, L = 2, 8, 16
    out_1x1, out_3x3_reduce, out_3x3 = 8, 8, 16
    out_5x5_reduce, out_5x5, out_pool = 4, 8, 8

    k_x, k1, k2a, k2b, k3a, k3b, k4 = jax.random.split(key, 7)
    params = dict(
        b1=make_conv_bn(k1, C_in, out_1x1, 1),
        b2a=make_conv_bn(k2a, C_in, out_3x3_reduce, 1),
        b2b=make_conv_bn(k2b, out_3x3_reduce, out_3x3, 3),
        b3a=make_conv_bn(k3a, C_in, out_5x5_reduce, 1),
        b3b=make_conv_bn(k3b, out_5x5_reduce, out_5x5, 5),
        b4=make_conv_bn(k4, C_in, out_pool, 1),
    )
    x = jax.random.normal(k_x, (B, C_in, L), jnp.float32)

    out = jax.block_until_ready(inception_forward(x, params))

    c_total = out_1x1 + out_3x3 + out_5x5 + out_pool
    assert out.shape == (B, c_total, L), out.shape

    ref = ref_forward(x, params)
    err = float(jnp.max(jnp.abs(out - ref)))
    assert err < 1e-4, f"max abs error {err}"

    print("KERNEL_OK")
</pallas_src>

<mosaic_0001>
module attributes {stable_mosaic.version = 11 : i64} {
  func.func @inception_kernel(%arg0: i32, %arg1: memref<32x8xf32, #tpu.memory_space<vmem>>, %arg2: memref<8x12xf32, #tpu.memory_space<vmem>>, %arg3: memref<1x12xf32, #tpu.memory_space<vmem>>, %arg4: memref<1x12xf32, #tpu.memory_space<vmem>>, %arg5: memref<60x128xf32, #tpu.memory_space<vmem>>, %arg6: memref<1x128xf32, #tpu.memory_space<vmem>>, %arg7: memref<1x128xf32, #tpu.memory_space<vmem>>, %arg8: memref<32x128xf32, #tpu.memory_space<vmem>>) attributes {dimension_semantics = [#tpu.dimension_semantics<parallel>], iteration_bounds = array<i64: 1>, scalar_prefetch = 0 : i64, scratch_operands = 0 : i64, tpu.core_type = #tpu.core_type<tc>, window_params = [{transform_indices = @transform_0, window_bounds = array<i64: 32, 8>}, {pipeline_mode = #tpu.pipeline_mode<synchronous>, transform_indices = @transform_1, window_bounds = array<i64: 8, 12>}, {pipeline_mode = #tpu.pipeline_mode<synchronous>, transform_indices = @transform_2, window_bounds = array<i64: 1, 12>}, {pipeline_mode = #tpu.pipeline_mode<synchronous>, transform_indices = @transform_3, window_bounds = array<i64: 1, 12>}, {pipeline_mode = #tpu.pipeline_mode<synchronous>, transform_indices = @transform_4, window_bounds = array<i64: 60, 128>}, {pipeline_mode = #tpu.pipeline_mode<synchronous>, transform_indices = @transform_5, window_bounds = array<i64: 1, 128>}, {pipeline_mode = #tpu.pipeline_mode<synchronous>, transform_indices = @transform_6, window_bounds = array<i64: 1, 128>}, {transform_indices = @transform_7, window_bounds = array<i64: 32, 128>}]} {
    %c0 = arith.constant 0 : index
    %c0_0 = arith.constant 0 : index
    %0 = vector.load %arg1[%c0, %c0_0] : memref<32x8xf32, #tpu.memory_space<vmem>>, vector<32x8xf32>
    %c0_1 = arith.constant 0 : index
    %c0_2 = arith.constant 0 : index
    %1 = vector.load %arg2[%c0_1, %c0_2] : memref<8x12xf32, #tpu.memory_space<vmem>>, vector<8x12xf32>
    %cst = arith.constant dense<0.000000e+00> : vector<32x12xf32>
    %2 = tpu.matmul %0, %1, %cst {dimension_numbers = #tpu.dot_dimension_numbers<[1], [0], [0], [1], [0, 0, 1, 1], [], []>} : vector<32x8xf32>, vector<8x12xf32>, vector<32x12xf32> -> vector<32x12xf32>
    %c0_3 = arith.constant 0 : index
    %c0_4 = arith.constant 0 : index
    %3 = vector.load %arg3[%c0_3, %c0_4] : memref<1x12xf32, #tpu.memory_space<vmem>>, vector<1x12xf32>
    %4 = vector.broadcast %3 : vector<1x12xf32> to vector<32x12xf32>
    %5 = arith.mulf %2, %4 : vector<32x12xf32>
    %c0_5 = arith.constant 0 : index
    %c0_6 = arith.constant 0 : index
    %6 = vector.load %arg4[%c0_5, %c0_6] : memref<1x12xf32, #tpu.memory_space<vmem>>, vector<1x12xf32>
    %7 = vector.broadcast %6 : vector<1x12xf32> to vector<32x12xf32>
    %8 = arith.addf %5, %7 : vector<32x12xf32>
    %cst_7 = arith.constant 0.000000e+00 : f32
    %9 = vector.broadcast %cst_7 : f32 to vector<32x12xf32>
    %10 = arith.maximumf %8, %9 : vector<32x12xf32>
    %11 = vector.extract_strided_slice %10 {offsets = [0, 0], sizes = [32, 8], strides = [1, 1]} : vector<32x12xf32> to vector<32x8xf32>
    %12 = vector.extract_strided_slice %10 {offsets = [0, 8], sizes = [32, 4], strides = [1, 1]} : vector<32x12xf32> to vector<32x4xf32>
    %13 = tpu.iota {dimensions = array<i32: 0>} : vector<32x8xi32>
    %c16_i32 = arith.constant 16 : i32
    %c0_i32 = arith.constant 0 : i32
    %14 = arith.cmpi eq, %c16_i32, %c0_i32 : i32
    %c1_i32 = arith.constant 1 : i32
    %15 = arith.select %14, %c1_i32, %c16_i32 : i32
    %16 = vector.broadcast %15 : i32 to vector<32x8xi32>
    %17 = arith.remsi %13, %16 : vector<32x8xi32>
    %c0_i32_8 = arith.constant 0 : i32
    %18 = vector.broadcast %c0_i32_8 : i32 to vector<32x8xi32>
    %19 = arith.cmpi ne, %17, %18 : vector<32x8xi32>
    %c0_i32_9 = arith.constant 0 : i32
    %20 = vector.broadcast %c0_i32_9 : i32 to vector<32x8xi32>
    %21 = arith.cmpi slt, %17, %20 : vector<32x8xi32>
    %c0_i32_10 = arith.constant 0 : i32
    %22 = arith.cmpi slt, %15, %c0_i32_10 : i32
    %23 = vector.broadcast %22 : i1 to vector<32x8xi1>
    %24 = vector.broadcast %23 : vector<32x8xi1> to vector<32x8xi1>
    %25 = arith.xori %21, %24 : vector<32x8xi1>
    %26 = arith.andi %25, %19 : vector<32x8xi1>
    %27 = vector.broadcast %15 : i32 to vector<32x8xi32>
    %28 = arith.addi %17, %27 : vector<32x8xi32>
    %29 = arith.select %26, %28, %17 : vector<32x8xi1>, vector<32x8xi32>
    %30 = vector.extract_strided_slice %0 {offsets = [31, 0], sizes = [1, 8], strides = [1, 1]} : vector<32x8xf32> to vector<1x8xf32>
    %31 = vector.extract_strided_slice %0 {offsets = [0, 0], sizes = [31, 8], strides = [1, 1]} : vector<32x8xf32> to vector<31x8xf32>
    %32 = tpu.concatenate %30, %31 in 0 : vector<1x8xf32>, vector<31x8xf32> -> vector<32x8xf32>
    %c1_i32_11 = arith.constant 1 : i32
    %33 = vector.broadcast %c1_i32_11 : i32 to vector<32x8xi32>
    %34 = arith.cmpi slt, %29, %33 : vector<32x8xi32>
    %35 = arith.select %34, %0, %32 : vector<32x8xi1>, vector<32x8xf32>
    %36 = arith.maximumf %0, %35 : vector<32x8xf32>
    %37 = tpu.iota {dimensions = array<i32: 0>} : vector<32x8xi32>
    %c16_i32_12 = arith.constant 16 : i32
    %c0_i32_13 = arith.constant 0 : i32
    %38 = arith.cmpi eq, %c16_i32_12, %c0_i32_13 : i32
    %c1_i32_14 = arith.constant 1 : i32
    %39 = arith.select %38, %c1_i32_14, %c16_i32_12 : i32
    %40 = vector.broadcast %39 : i32 to vector<32x8xi32>
    %41 = arith.remsi %37, %40 : vector<32x8xi32>
    %c0_i32_15 = arith.constant 0 : i32
    %42 = vector.broadcast %c0_i32_15 : i32 to vector<32x8xi32>
    %43 = arith.cmpi ne, %41, %42 : vector<32x8xi32>
    %c0_i32_16 = arith.constant 0 : i32
    %44 = vector.broadcast %c0_i32_16 : i32 to vector<32x8xi32>
    %45 = arith.cmpi slt, %41, %44 : vector<32x8xi32>
    %c0_i32_17 = arith.constant 0 : i32
    %46 = arith.cmpi slt, %39, %c0_i32_17 : i32
    %47 = vector.broadcast %46 : i1 to vector<32x8xi1>
    %48 = vector.broadcast %47 : vector<32x8xi1> to vector<32x8xi1>
    %49 = arith.xori %45, %48 : vector<32x8xi1>
    %50 = arith.andi %49, %43 : vector<32x8xi1>
    %51 = vector.broadcast %39 : i32 to vector<32x8xi32>
    %52 = arith.addi %41, %51 : vector<32x8xi32>
    %53 = arith.select %50, %52, %41 : vector<32x8xi1>, vector<32x8xi32>
    %54 = vector.extract_strided_slice %0 {offsets = [1, 0], sizes = [31, 8], strides = [1, 1]} : vector<32x8xf32> to vector<31x8xf32>
    %55 = vector.extract_strided_slice %0 {offsets = [0, 0], sizes = [1, 8], strides = [1, 1]} : vector<32x8xf32> to vector<1x8xf32>
    %56 = tpu.concatenate %54, %55 in 0 : vector<31x8xf32>, vector<1x8xf32> -> vector<32x8xf32>
    %c15_i32 = arith.constant 15 : i32
    %57 = vector.broadcast %c15_i32 : i32 to vector<32x8xi32>
    %58 = arith.cmpi sge, %53, %57 : vector<32x8xi32>
    %59 = arith.select %58, %0, %56 : vector<32x8xi1>, vector<32x8xf32>
    %60 = arith.maximumf %36, %59 : vector<32x8xf32>
    %61 = tpu.iota {dimensions = array<i32: 0>} : vector<32x8xi32>
    %c16_i32_18 = arith.constant 16 : i32
    %c0_i32_19 = arith.constant 0 : i32
    %62 = arith.cmpi eq, %c16_i32_18, %c0_i32_19 : i32
    %c1_i32_20 = arith.constant 1 : i32
    %63 = arith.select %62, %c1_i32_20, %c16_i32_18 : i32
    %64 = vector.broadcast %63 : i32 to vector<32x8xi32>
    %65 = arith.remsi %61, %64 : vector<32x8xi32>
    %c0_i32_21 = arith.constant 0 : i32
    %66 = vector.broadcast %c0_i32_21 : i32 to vector<32x8xi32>
    %67 = arith.cmpi ne, %65, %66 : vector<32x8xi32>
    %c0_i32_22 = arith.constant 0 : i32
    %68 = vector.broadcast %c0_i32_22 : i32 to vector<32x8xi32>
    %69 = arith.cmpi slt, %65, %68 : vector<32x8xi32>
    %c0_i32_23 = arith.constant 0 : i32
    %70 = arith.cmpi slt, %63, %c0_i32_23 : i32
    %71 = vector.broadcast %70 : i1 to vector<32x8xi1>
    %72 = vector.broadcast %71 : vector<32x8xi1> to vector<32x8xi1>
    %73 = arith.xori %69, %72 : vector<32x8xi1>
    %74 = arith.andi %73, %67 : vector<32x8xi1>
    %75 = vector.broadcast %63 : i32 to vector<32x8xi32>
    %76 = arith.addi %65, %75 : vector<32x8xi32>
    %77 = arith.select %74, %76, %65 : vector<32x8xi1>, vector<32x8xi32>
    %78 = vector.extract_strided_slice %11 {offsets = [31, 0], sizes = [1, 8], strides = [1, 1]} : vector<32x8xf32> to vector<1x8xf32>
    %79 = vector.extract_strided_slice %11 {offsets = [0, 0], sizes = [31, 8], strides = [1, 1]} : vector<32x8xf32> to vector<31x8xf32>
    %80 = tpu.concatenate %78, %79 in 0 : vector<1x8xf32>, vector<31x8xf32> -> vector<32x8xf32>
    %c1_i32_24 = arith.constant 1 : i32
    %81 = vector.broadcast %c1_i32_24 : i32 to vector<32x8xi32>
    %82 = arith.cmpi slt, %77, %81 : vector<32x8xi32>
    %cst_25 = arith.constant 0.000000e+00 : f32
    %83 = vector.broadcast %cst_25 : f32 to vector<32x8xf32>
    %84 = arith.select %82, %83, %80 : vector<32x8xi1>, vector<32x8xf32>
    %85 = tpu.iota {dimensions = array<i32: 0>} : vector<32x8xi32>
    %c16_i32_26 = arith.constant 16 : i32
    %c0_i32_27 = arith.constant 0 : i32
    %86 = arith.cmpi eq, %c16_i32_26, %c0_i32_27 : i32
    %c1_i32_28 = arith.constant 1 : i32
    %87 = arith.select %86, %c1_i32_28, %c16_i32_26 : i32
    %88 = vector.broadcast %87 : i32 to vector<32x8xi32>
    %89 = arith.remsi %85, %88 : vector<32x8xi32>
    %c0_i32_29 = arith.constant 0 : i32
    %90 = vector.broadcast %c0_i32_29 : i32 to vector<32x8xi32>
    %91 = arith.cmpi ne, %89, %90 : vector<32x8xi32>
    %c0_i32_30 = arith.constant 0 : i32
    %92 = vector.broadcast %c0_i32_30 : i32 to vector<32x8xi32>
    %93 = arith.cmpi slt, %89, %92 : vector<32x8xi32>
    %c0_i32_31 = arith.constant 0 : i32
    %94 = arith.cmpi slt, %87, %c0_i32_31 : i32
    %95 = vector.broadcast %94 : i1 to vector<32x8xi1>
    %96 = vector.broadcast %95 : vector<32x8xi1> to vector<32x8xi1>
    %97 = arith.xori %93, %96 : vector<32x8xi1>
    %98 = arith.andi %97, %91 : vector<32x8xi1>
    %99 = vector.broadcast %87 : i32 to vector<32x8xi32>
    %100 = arith.addi %89, %99 : vector<32x8xi32>
    %101 = arith.select %98, %100, %89 : vector<32x8xi1>, vector<32x8xi32>
    %102 = vector.extract_strided_slice %11 {offsets = [1, 0], sizes = [31, 8], strides = [1, 1]} : vector<32x8xf32> to vector<31x8xf32>
    %103 = vector.extract_strided_slice %11 {offsets = [0, 0], sizes = [1, 8], strides = [1, 1]} : vector<32x8xf32> to vector<1x8xf32>
    %104 = tpu.concatenate %102, %103 in 0 : vector<31x8xf32>, vector<1x8xf32> -> vector<32x8xf32>
    %c15_i32_32 = arith.constant 15 : i32
    %105 = vector.broadcast %c15_i32_32 : i32 to vector<32x8xi32>
    %106 = arith.cmpi sge, %101, %105 : vector<32x8xi32>
    %cst_33 = arith.constant 0.000000e+00 : f32
    %107 = vector.broadcast %cst_33 : f32 to vector<32x8xf32>
    %108 = arith.select %106, %107, %104 : vector<32x8xi1>, vector<32x8xf32>
    %109 = tpu.iota {dimensions = array<i32: 0>} : vector<32x4xi32>
    %c16_i32_34 = arith.constant 16 : i32
    %c0_i32_35 = arith.constant 0 : i32
    %110 = arith.cmpi eq, %c16_i32_34, %c0_i32_35 : i32
    %c1_i32_36 = arith.constant 1 : i32
    %111 = arith.select %110, %c1_i32_36, %c16_i32_34 : i32
    %112 = vector.broadcast %111 : i32 to vector<32x4xi32>
    %113 = arith.remsi %109, %112 : vector<32x4xi32>
    %c0_i32_37 = arith.constant 0 : i32
    %114 = vector.broadcast %c0_i32_37 : i32 to vector<32x4xi32>
    %115 = arith.cmpi ne, %113, %114 : vector<32x4xi32>
    %c0_i32_38 = arith.constant 0 : i32
    %116 = vector.broadcast %c0_i32_38 : i32 to vector<32x4xi32>
    %117 = arith.cmpi slt, %113, %116 : vector<32x4xi32>
    %c0_i32_39 = arith.constant 0 : i32
    %118 = arith.cmpi slt, %111, %c0_i32_39 : i32
    %119 = vector.broadcast %118 : i1 to vector<32x4xi1>
    %120 = vector.broadcast %119 : vector<32x4xi1> to vector<32x4xi1>
    %121 = arith.xori %117, %120 : vector<32x4xi1>
    %122 = arith.andi %121, %115 : vector<32x4xi1>
    %123 = vector.broadcast %111 : i32 to vector<32x4xi32>
    %124 = arith.addi %113, %123 : vector<32x4xi32>
    %125 = arith.select %122, %124, %113 : vector<32x4xi1>, vector<32x4xi32>
    %126 = vector.extract_strided_slice %12 {offsets = [30, 0], sizes = [2, 4], strides = [1, 1]} : vector<32x4xf32> to vector<2x4xf32>
    %127 = vector.extract_strided_slice %12 {offsets = [0, 0], sizes = [30, 4], strides = [1, 1]} : vector<32x4xf32> to vector<30x4xf32>
    %128 = tpu.concatenate %126, %127 in 0 : vector<2x4xf32>, vector<30x4xf32> -> vector<32x4xf32>
    %c2_i32 = arith.constant 2 : i32
    %129 = vector.broadcast %c2_i32 : i32 to vector<32x4xi32>
    %130 = arith.cmpi slt, %125, %129 : vector<32x4xi32>
    %cst_40 = arith.constant 0.000000e+00 : f32
    %131 = vector.broadcast %cst_40 : f32 to vector<32x4xf32>
    %132 = arith.select %130, %131, %128 : vector<32x4xi1>, vector<32x4xf32>
    %133 = tpu.iota {dimensions = array<i32: 0>} : vector<32x4xi32>
    %c16_i32_41 = arith.constant 16 : i32
    %c0_i32_42 = arith.constant 0 : i32
    %134 = arith.cmpi eq, %c16_i32_41, %c0_i32_42 : i32
    %c1_i32_43 = arith.constant 1 : i32
    %135 = arith.select %134, %c1_i32_43, %c16_i32_41 : i32
    %136 = vector.broadcast %135 : i32 to vector<32x4xi32>
    %137 = arith.remsi %133, %136 : vector<32x4xi32>
    %c0_i32_44 = arith.constant 0 : i32
    %138 = vector.broadcast %c0_i32_44 : i32 to vector<32x4xi32>
    %139 = arith.cmpi ne, %137, %138 : vector<32x4xi32>
    %c0_i32_45 = arith.constant 0 : i32
    %140 = vector.broadcast %c0_i32_45 : i32 to vector<32x4xi32>
    %141 = arith.cmpi slt, %137, %140 : vector<32x4xi32>
    %c0_i32_46 = arith.constant 0 : i32
    %142 = arith.cmpi slt, %135, %c0_i32_46 : i32
    %143 = vector.broadcast %142 : i1 to vector<32x4xi1>
    %144 = vector.broadcast %143 : vector<32x4xi1> to vector<32x4xi1>
    %145 = arith.xori %141, %144 : vector<32x4xi1>
    %146 = arith.andi %145, %139 : vector<32x4xi1>
    %147 = vector.broadcast %135 : i32 to vector<32x4xi32>
    %148 = arith.addi %137, %147 : vector<32x4xi32>
    %149 = arith.select %146, %148, %137 : vector<32x4xi1>, vector<32x4xi32>
    %150 = vector.extract_strided_slice %12 {offsets = [31, 0], sizes = [1, 4], strides = [1, 1]} : vector<32x4xf32> to vector<1x4xf32>
    %151 = vector.extract_strided_slice %12 {offsets = [0, 0], sizes = [31, 4], strides = [1, 1]} : vector<32x4xf32> to vector<31x4xf32>
    %152 = tpu.concatenate %150, %151 in 0 : vector<1x4xf32>, vector<31x4xf32> -> vector<32x4xf32>
    %c1_i32_47 = arith.constant 1 : i32
    %153 = vector.broadcast %c1_i32_47 : i32 to vector<32x4xi32>
    %154 = arith.cmpi slt, %149, %153 : vector<32x4xi32>
    %cst_48 = arith.constant 0.000000e+00 : f32
    %155 = vector.broadcast %cst_48 : f32 to vector<32x4xf32>
    %156 = arith.select %154, %155, %152 : vector<32x4xi1>, vector<32x4xf32>
    %157 = tpu.iota {dimensions = array<i32: 0>} : vector<32x4xi32>
    %c16_i32_49 = arith.constant 16 : i32
    %c0_i32_50 = arith.constant 0 : i32
    %158 = arith.cmpi eq, %c16_i32_49, %c0_i32_50 : i32
    %c1_i32_51 = arith.constant 1 : i32
    %159 = arith.select %158, %c1_i32_51, %c16_i32_49 : i32
    %160 = vector.broadcast %159 : i32 to vector<32x4xi32>
    %161 = arith.remsi %157, %160 : vector<32x4xi32>
    %c0_i32_52 = arith.constant 0 : i32
    %162 = vector.broadcast %c0_i32_52 : i32 to vector<32x4xi32>
    %163 = arith.cmpi ne, %161, %162 : vector<32x4xi32>
    %c0_i32_53 = arith.constant 0 : i32
    %164 = vector.broadcast %c0_i32_53 : i32 to vector<32x4xi32>
    %165 = arith.cmpi slt, %161, %164 : vector<32x4xi32>
    %c0_i32_54 = arith.constant 0 : i32
    %166 = arith.cmpi slt, %159, %c0_i32_54 : i32
    %167 = vector.broadcast %166 : i1 to vector<32x4xi1>
    %168 = vector.broadcast %167 : vector<32x4xi1> to vector<32x4xi1>
    %169 = arith.xori %165, %168 : vector<32x4xi1>
    %170 = arith.andi %169, %163 : vector<32x4xi1>
    %171 = vector.broadcast %159 : i32 to vector<32x4xi32>
    %172 = arith.addi %161, %171 : vector<32x4xi32>
    %173 = arith.select %170, %172, %161 : vector<32x4xi1>, vector<32x4xi32>
    %174 = vector.extract_strided_slice %12 {offsets = [1, 0], sizes = [31, 4], strides = [1, 1]} : vector<32x4xf32> to vector<31x4xf32>
    %175 = vector.extract_strided_slice %12 {offsets = [0, 0], sizes = [1, 4], strides = [1, 1]} : vector<32x4xf32> to vector<1x4xf32>
    %176 = tpu.concatenate %174, %175 in 0 : vector<31x4xf32>, vector<1x4xf32> -> vector<32x4xf32>
    %c15_i32_55 = arith.constant 15 : i32
    %177 = vector.broadcast %c15_i32_55 : i32 to vector<32x4xi32>
    %178 = arith.cmpi sge, %173, %177 : vector<32x4xi32>
    %cst_56 = arith.constant 0.000000e+00 : f32
    %179 = vector.broadcast %cst_56 : f32 to vector<32x4xf32>
    %180 = arith.select %178, %179, %176 : vector<32x4xi1>, vector<32x4xf32>
    %181 = tpu.iota {dimensions = array<i32: 0>} : vector<32x4xi32>
    %c16_i32_57 = arith.constant 16 : i32
    %c0_i32_58 = arith.constant 0 : i32
    %182 = arith.cmpi eq, %c16_i32_57, %c0_i32_58 : i32
    %c1_i32_59 = arith.constant 1 : i32
    %183 = arith.select %182, %c1_i32_59, %c16_i32_57 : i32
    %184 = vector.broadcast %183 : i32 to vector<32x4xi32>
    %185 = arith.remsi %181, %184 : vector<32x4xi32>
    %c0_i32_60 = arith.constant 0 : i32
    %186 = vector.broadcast %c0_i32_60 : i32 to vector<32x4xi32>
    %187 = arith.cmpi ne, %185, %186 : vector<32x4xi32>
    %c0_i32_61 = arith.constant 0 : i32
    %188 = vector.broadcast %c0_i32_61 : i32 to vector<32x4xi32>
    %189 = arith.cmpi slt, %185, %188 : vector<32x4xi32>
    %c0_i32_62 = arith.constant 0 : i32
    %190 = arith.cmpi slt, %183, %c0_i32_62 : i32
    %191 = vector.broadcast %190 : i1 to vector<32x4xi1>
    %192 = vector.broadcast %191 : vector<32x4xi1> to vector<32x4xi1>
    %193 = arith.xori %189, %192 : vector<32x4xi1>
    %194 = arith.andi %193, %187 : vector<32x4xi1>
    %195 = vector.broadcast %183 : i32 to vector<32x4xi32>
    %196 = arith.addi %185, %195 : vector<32x4xi32>
    %197 = arith.select %194, %196, %185 : vector<32x4xi1>, vector<32x4xi32>
    %198 = vector.extract_strided_slice %12 {offsets = [2, 0], sizes = [30, 4], strides = [1, 1]} : vector<32x4xf32> to vector<30x4xf32>
    %199 = vector.extract_strided_slice %12 {offsets = [0, 0], sizes = [2, 4], strides = [1, 1]} : vector<32x4xf32> to vector<2x4xf32>
    %200 = tpu.concatenate %198, %199 in 0 : vector<30x4xf32>, vector<2x4xf32> -> vector<32x4xf32>
    %c14_i32 = arith.constant 14 : i32
    %201 = vector.broadcast %c14_i32 : i32 to vector<32x4xi32>
    %202 = arith.cmpi sge, %197, %201 : vector<32x4xi32>
    %cst_63 = arith.constant 0.000000e+00 : f32
    %203 = vector.broadcast %cst_63 : f32 to vector<32x4xf32>
    %204 = arith.select %202, %203, %200 : vector<32x4xi1>, vector<32x4xf32>
    %205 = tpu.concatenate %0, %84, %11, %108, %132, %156, %12, %180, %204, %60 in 1 : vector<32x8xf32>, vector<32x8xf32>, vector<32x8xf32>, vector<32x8xf32>, vector<32x4xf32>, vector<32x4xf32>, vector<32x4xf32>, vector<32x4xf32>, vector<32x4xf32>, vector<32x8xf32> -> vector<32x60xf32>
    %c0_64 = arith.constant 0 : index
    %c0_65 = arith.constant 0 : index
    %206 = vector.load %arg5[%c0_64, %c0_65] : memref<60x128xf32, #tpu.memory_space<vmem>>, vector<60x128xf32>
    %cst_66 = arith.constant dense<0.000000e+00> : vector<32x128xf32>
    %207 = tpu.matmul %205, %206, %cst_66 {dimension_numbers = #tpu.dot_dimension_numbers<[1], [0], [0], [1], [0, 0, 1, 1], [], []>} : vector<32x60xf32>, vector<60x128xf32>, vector<32x128xf32> -> vector<32x128xf32>
    %c0_67 = arith.constant 0 : index
    %c0_68 = arith.constant 0 : index
    %208 = vector.load %arg6[%c0_67, %c0_68] : memref<1x128xf32, #tpu.memory_space<vmem>>, vector<1x128xf32>
    %209 = vector.broadcast %208 : vector<1x128xf32> to vector<32x128xf32>
    %210 = arith.mulf %207, %209 : vector<32x128xf32>
    %c0_69 = arith.constant 0 : index
    %c0_70 = arith.constant 0 : index
    %211 = vector.load %arg7[%c0_69, %c0_70] : memref<1x128xf32, #tpu.memory_space<vmem>>, vector<1x128xf32>
    %212 = vector.broadcast %211 : vector<1x128xf32> to vector<32x128xf32>
    %213 = arith.addf %210, %212 : vector<32x128xf32>
    %cst_71 = arith.constant 0.000000e+00 : f32
    %214 = vector.broadcast %cst_71 : f32 to vector<32x128xf32>
    %215 = arith.maximumf %213, %214 : vector<32x128xf32>
    %c0_72 = arith.constant 0 : index
    %c0_73 = arith.constant 0 : index
    %216 = vector.load %arg8[%c0_72, %c0_73] : memref<32x128xf32, #tpu.memory_space<vmem>>, vector<32x128xf32>
    tpu.vector_store %arg8[%c0_72, %c0_73], %215 {strides = array<i32>} : memref<32x128xf32, #tpu.memory_space<vmem>>, vector<32x128xf32>,
    return
  }
  func.func @transform_0(%arg0: i32) -> (i32, i32) {
    %c0_i32 = arith.constant 0 : i32
    %c0_i32_0 = arith.constant 0 : i32
    return %arg0, %c0_i32 : i32, i32
  }
  func.func @transform_1(%arg0: i32) -> (i32, i32) {
    %c0_i32 = arith.constant 0 : i32
    %c0_i32_0 = arith.constant 0 : i32
    %c0_i32_1 = arith.constant 0 : i32
    return %c0_i32, %c0_i32_0 : i32, i32
  }
  func.func @transform_2(%arg0: i32) -> (i32, i32) {
    %c0_i32 = arith.constant 0 : i32
    %c0_i32_0 = arith.constant 0 : i32
    %c0_i32_1 = arith.constant 0 : i32
    return %c0_i32, %c0_i32_0 : i32, i32
  }
  func.func @transform_3(%arg0: i32) -> (i32, i32) {
    %c0_i32 = arith.constant 0 : i32
    %c0_i32_0 = arith.constant 0 : i32
    %c0_i32_1 = arith.constant 0 : i32
    return %c0_i32, %c0_i32_0 : i32, i32
  }
  func.func @transform_4(%arg0: i32) -> (i32, i32) {
    %c0_i32 = arith.constant 0 : i32
    %c0_i32_0 = arith.constant 0 : i32
    %c0_i32_1 = arith.constant 0 : i32
    return %c0_i32, %c0_i32_0 : i32, i32
  }
  func.func @transform_5(%arg0: i32) -> (i32, i32) {
    %c0_i32 = arith.constant 0 : i32
    %c0_i32_0 = arith.constant 0 : i32
    %c0_i32_1 = arith.constant 0 : i32
    return %c0_i32, %c0_i32_0 : i32, i32
  }
  func.func @transform_6(%arg0: i32) -> (i32, i32) {
    %c0_i32 = arith.constant 0 : i32
    %c0_i32_0 = arith.constant 0 : i32
    %c0_i32_1 = arith.constant 0 : i32
    return %c0_i32, %c0_i32_0 : i32, i32
  }
  func.func @transform_7(%arg0: i32) -> (i32, i32) {
    %c0_i32 = arith.constant 0 : i32
    %c0_i32_0 = arith.constant 0 : i32
    return %arg0, %c0_i32 : i32, i32
  }
}

</mosaic_0001>

<bundles_post_ra>
// kernel: tpu_custom_call.1
= control target key start
LH: loop header
LB: loop body
LE: loop exit
PB: predicated region body
PF: predicated region fallthrough
CT: control target
= control target key end

     0   :  { %12 = vsyncpa [#allocation3], 0  ;;  %s1184_s0 = inlined_call_operand.vmem [shape: f32[32,8], index: 0, kind: input, shape index: {}]   ;;  %s1185_s1 = inlined_call_operand.vmem [shape: f32[8,12], index: 1, kind: input, shape index: {}]   ;;  %s1186_s2 = inlined_call_operand.vmem [shape: f32[1,12], index: 2, kind: input, shape index: {}]   ;;  %s1187_s3 = inlined_call_operand.vmem [shape: f32[1,12], index: 3, kind: input, shape index: {}]   ;;  %s1188_s4 = inlined_call_operand.hbm [shape: f32[60,128], index: 4, kind: input, shape index: {}]   ;;  %s1189_s5 = inlined_call_operand.vmem [shape: f32[1,128], index: 5, kind: input, shape index: {}]   ;;  %s1190_s6 = inlined_call_operand.vmem [shape: f32[1,128], index: 6, kind: input, shape index: {}]   ;;  %s1191_s7 = inlined_call_operand.hbm [shape: f32[32,128], index: 7, kind: output, shape index: {}]  }
   0x1   :  { %13 = vsyncpa [#allocation4], 0  ;;  %s832_s24 = smov [#allocation2]   ;;  %s784_s28 = scalar_lea.hbm %s1188_s4, 1024 }
   0x2   :  { %s27_s25 = sshll.u32 %s832_s24, 4  ;;  %p785_p0 = scmp.ne.s32.totalorder %s1188_s4, %s784_s28  ;;  %s28_s25 = int_to_ptr.vmem [resolvable:$true] %s27_s25 }
   0x3   :  { %p788_p1 = scmp.lt.u32.totalorder %s784_s28, %s1188_s4 }
   0x5   :  { %p790_p2 = pnand %p788_p1, %p785_p0 }
   0x7   :  { %793 = shalt.err (!%p790_p2)
}
   0x8   :  { %s794_s10 = scalar_lea.vmem %s28_s25, 1024  ;;  %p799_p4 = scmp.lt.s32.totalorder %s28_s25, %s28_s25 }
   0x9   :  { %p795_p3 = scmp.ne.s32.totalorder %s28_s25, %s794_s10  ;;  %p800_p5 = scmp.lt.s32.totalorder %s794_s10, %s794_s10 }
   0xb   :  { %p801_p6 = por %p800_p5, %p799_p4 }
   0xd   :  { %p802_p7 = pnand %p801_p6, %p795_p3 }
   0xf   :  { %805 = shalt.err (!%p802_p7)
}
  0x10   :  { %s833_s11 = smov 128   ;;  %s834_s12 = smov 8  }
  0x11   :  { %33 = dma.hbm_to_vmem [thread:$0]  %s1188_s4, 1024, %s28_s25, [#allocation3], %s833_s11, %s833_s11, %s834_s12  }
  0x12   :  { %828 = dma.done.wait [#allocation3], 1024  }
  0x13   :  { %829 = vsyncadd [#allocation3], 4294966272  ;;  %vm46_vm0 = vcmask 64512   ;;  %v45_v0 = vld [vmem:[%s1185_s1] sm:$0xff]  ;;  %v910_v2 = vld [vmem:[%s1184_s0 + $0x8] sm:$0xff]  ;;  %v170_v5 = vlaneseq  ;;  %vm225_vm1 = vcmask 1040384  }
  0x14   :  { %v905_v1 = vld [vmem:[%s1184_s0] sm:$0xff]  ;;  %716 = vmatprep.subr.mxu0 %v45_v0  ;;  %v917_v3 = vld [vmem:[%s1184_s0 + $0x10] sm:$0xff]  ;;  %v926_v4 = vld [vmem:[%s1184_s0 + $0x18] sm:$0xff]  ;;  %v251_v14 = vrot.slane %v910_v2, 1  ;;  %vm249_vm3 = vcmask 1046528   ;;  %s835_s0 = smov 52  }
  0x15   :  { %718 = vmatprep.mubr.msk.f32.mxu0 %vm46_vm0, %v905_v1  ;;  %717 = vmatpush3.msra.mxu0 %v45_v0  ;;  %v171_v6 = vshrl.u32 %v170_v5, 7  ;;  %v223_v8 = vrot.slane %v926_v4, 7  ;;  %v226_v9 = vrot.slane %v905_v1, 7  ;;  %v250_v13 = vrot.slane %v905_v1, 1  ;;  %v690_v20 = vld [vmem:[%s1186_s2] ss:$0 sm:$0xff] }
  0x16   :  { %719 = vmatmul.mubr.msk.f32.vlgmr.msra.gmra.mrb[0].mxu0 %vm46_vm0, %v910_v2  ;;  %v691_v23 = vld [vmem:[%s1187_s3] ss:$0 sm:$0xff]  ;;  %vm315_vm4 = vcmask 1041408   ;;  %vm335_vm5 = vcmask 1045504   ;;  %s836_s2 = smov 16   ;;  %s837_s3 = smov 32  }
  0x17   :  { %721 = vmatprep.mubr.msk.f32.mxu0 %vm46_vm0, %v917_v3  ;;  %v179_v7 = vand.u32 15, %v171_v6  ;;  %v236_v10 = vsel %vm225_vm1, %v223_v8, %v226_v9  ;;  %v252_v16 = vsel %vm249_vm3, %v250_v13, %v251_v14  ;;  %v174_v18 = vadd.s32 24, %v171_v6  ;;  %s838_s27 = smov 24   ;;  %s839_s28 = smov 28   ;;  %v533_v11 = vld [vmem:[#allocation2 + $0x20] sm:$0xff] }
  0x18   :  { %v173_v19 = vadd.s32 16, %v171_v6  ;;  %v172_v21 = vadd.s32 8, %v171_v6  ;;  %s840_s29 = smov 36   ;;  %s841_s30 = smov 40   ;;  %vm550_vm13 = vcmask 1043456   ;;  %vm842_vm14 = vmmov 1  }
  0x19   :  { %vm937_vm2 = vcmp.lt.s32.totalorder %v179_v7, 1  ;;  %v200_v24 = vand.u32 15, %v174_v18  ;;  %vm963_vm7 = vcmp.lt.s32.totalorder %v179_v7, 2  ;;  %vm759_vm15 = vmpackc.low %vm550_vm13, %vm842_vm14 }
  0x1a   :  { %722 = vmatmul.mubr.msk.f32.gmra.mrb[2].mxu0 %vm46_vm0, %v926_v4  ;;  %v241_v12 = vsel %vm937_vm2, %v905_v1, %v236_v10  ;;  %v193_v27 = vand.u32 15, %v173_v19  ;;  %v186_v29 = vand.u32 15, %v172_v21 }
  0x1b   :  { %v245_v15 = vmax.f32 %v905_v1, %v241_v12  ;;  %vm959_vm6 = vcmp.ge.s32.totalorder %v200_v24, 15  ;;  %vm975_vm10 = vcmp.ge.s32.totalorder %v200_v24, 14 }
  0x1c   :  { %vm967_vm8 = vcmp.lt.s32.totalorder %v193_v27, 1  ;;  %vm971_vm9 = vcmp.ge.s32.totalorder %v186_v29, 15  ;;  %vm980_vm11 = vcmp.lt.s32.totalorder %v193_v27, 2  ;;  %vm997_vm12 = vcmp.ge.s32.totalorder %v186_v29, 14 }
  0x1d   :  { %v271_v17 = vmax.f32 %v245_v15, %v252_v16 }
  0x1f   :  { %473 = vrot.lane.b32.xlu0 %v271_v17, %s835_s0 }
  0xe9   :  { %v720_v22 = vpop.f32.mrb[0].mxu0 }
  0xea   :  { %v152_v25 = vmul.f32 %v720_v22, %v690_v20  ;;  %v125_v26 = vpop.f32.mrb[1].mxu0 }
  0xeb   :  { %v151_v28 = vmul.f32 %v690_v20, %v125_v26 }
  0xec   :  { %v163_v30 = vadd.f32 %v691_v23, %v152_v25 }
  0xed   :  { %v162_v31 = vadd.f32 %v691_v23, %v151_v28  ;;  %v723_v32 = vpop.f32.mrb[2].mxu0 }
  0xee   :  { %v167_v34 = vmax.f32 %v163_v30, 0.0  ;;  %v154_v35 = vmul.f32 %v723_v32, %v690_v20  ;;  %v135_v36 = vpop.f32.mrb[3].mxu0 }
  0xef   :  { %v166_v39 = vmax.f32 %v162_v31, 0.0  ;;  %v153_v40 = vmul.f32 %v690_v20, %v135_v36  ;;  %v530_v36 = vld [vmem:[#allocation2 + $0x8] sm:$0xff] }
  0xf0   :  { %v165_v43 = vadd.f32 %v691_v23, %v154_v35  ;;  %375 = vrot.lane.b32.xlu0 %v167_v34, %s836_s2  ;;  %v282_v44 = vrot.slane %v167_v34, 7  ;;  %v297_v45 = vrot.slane %v167_v34, 1  ;;  %v317_v46 = vrot.slane %v167_v34, 6  ;;  %v529_v35 = vld [vmem:[#allocation2] sm:$0xff] }
  0xf1   :  { %v164_v47 = vadd.f32 %v691_v23, %v153_v40  ;;  %v281_v48 = vrot.slane %v166_v39, 7  ;;  %v296_v49 = vrot.slane %v166_v39, 1  ;;  %v316_v50 = vrot.slane %v166_v39, 6  ;;  %v532_v40 = vld [vmem:[#allocation2 + $0x18] sm:$0xff] }
  0xf2   :  { %v169_v51 = vmax.f32 %v165_v43, 0.0  ;;  %v336_v52 = vrot.slane %v166_v39, 2  ;;  %v337_v53 = vrot.slane %v167_v34, 2  ;;  %v746_v37 = vpack.c.bf16 %v530_v36, %v529_v35 }
  0xf3   :  { %v168_v55 = vmax.f32 %v164_v47, 0.0  ;;  %v283_v56 = vsel %vm225_vm1, %v281_v48, %v282_v44  ;;  %v298_v57 = vsel %vm249_vm3, %v296_v49, %v297_v45  ;;  %v318_v58 = vsel %vm315_vm4, %v316_v50, %v317_v46  ;;  %v536_v47 = vld [vmem:[#allocation2 + $0x38] sm:$0xf] }
  0xf4   :  { %431 = vrot.lane.b32.xlu0 %v167_v34, %s837_s3  ;;  %363 = vrot.lane.b32.xlu1 %v283_v56, %s834_s12  ;;  %v276_v59 = vrot.slane %v169_v51, 7  ;;  %v301_v60 = vrot.slane %v169_v51, 1  ;;  %v338_v61 = vsel %vm335_vm5, %v336_v52, %v337_v53  ;;  %v313_v62 = vrot.slane %v169_v51, 6 }
  0xf5   :  { %v284_v63 = vrot.slane %v168_v55, 7  ;;  %v299_v0 = vrot.slane %v168_v55, 1  ;;  %v319_v5 = vrot.slane %v168_v55, 6  ;;  %v339_v6 = vrot.slane %v168_v55, 2  ;;  %747 = vmatprep.subr.bf16.mxu0 %v746_v37  ;;  %764 = vmatprep.subr.bf16.mxu1 %v746_v37 }
  0xf6   :  { %v308_v7 = vsel %vm249_vm3, %v301_v60, %v296_v49  ;;  %v291_v10 = vsel %vm225_vm1, %v276_v59, %v281_v48  ;;  %v326_v12 = vsel %vm315_vm4, %v313_v62, %v316_v50  ;;  %v341_v15 = vrot.slane %v169_v51, 2  ;;  %749 = vmatpush3.bf16.msra.mxu0 %v746_v37  ;;  %768 = vmatpush3.bf16.msra.mxu1 %v746_v37 }
  0xf7   :  { %v286_v16 = vsel %vm225_vm1, %v284_v63, %v276_v59  ;;  %v302_v17 = vsel %vm249_vm3, %v299_v0, %v301_v60  ;;  %v312_v18 = vsel %vm959_vm6, 0.0, %v308_v7  ;;  %v321_v20 = vsel %vm315_vm4, %v319_v5, %v313_v62 }
  0xf8   :  { %373 = vrot.lane.b32.xlu0 %v166_v39, %s836_s2  ;;  %379 = vrot.lane.b32.xlu1 %v169_v51, %s836_s2  ;;  %v331_v21 = vsel %vm963_vm7, 0.0, %v326_v12  ;;  %v285_v22 = vsel %vm225_vm1, %v282_v44, %v284_v63  ;;  %v1008_v23 = vsel %vm335_vm5, %v339_v6, %v341_v15  ;;  %v300_v25 = vsel %vm249_vm3, %v297_v45, %v299_v0  ;;  %v534_v44 = vld [vmem:[#allocation2 + $0x28] sm:$0xff] }
  0xf9   :  { %v1012_v24 = vsel %vm967_vm8, 0.0, %v285_v22  ;;  %v1016_v26 = vsel %vm335_vm5, %v341_v15, %v336_v52  ;;  %v1019_v27 = vsel %vm315_vm4, %v317_v46, %v319_v5  ;;  %v1023_v28 = vsel %vm971_vm9, 0.0, %v300_v25  ;;  %v535_v46 = vld [vmem:[#allocation2 + $0x30] sm:$0xff] }
  0xfa   :  { %v356_v29 = vsel %vm975_vm10, 0.0, %v1016_v26  ;;  %v333_v30 = vsel %vm980_vm11, 0.0, %v1019_v27  ;;  %v1032_v31 = vsel %vm335_vm5, %v337_v53, %v339_v6  ;;  %v292_v34 = vsel %vm937_vm2, 0.0, %v291_v10 }
  0xfb   :  { %v354_v32 = vsel %vm997_vm12, 0.0, %v1032_v31  ;;  %v754_v45 = vpack.c.bf16 %v534_v44, %v533_v11  ;;  %v758_v48 = vpack.c.bf16 %v536_v47, %v535_v46  ;;  %v227_v49 = vrot.slane %v910_v2, 7 }
  0xfc   :  { %429 = vrot.lane.b32.xlu0 %v166_v39, %s837_s3  ;;  %435 = vrot.lane.b32.xlu1 %v169_v51, %s837_s3  ;;  %v531_v39 = vld [vmem:[#allocation2 + $0x10] sm:$0xff]  ;;  %v229_v50 = vrot.slane %v917_v3, 7  ;;  %v253_v51 = vrot.slane %v917_v3, 1  ;;  %vm494_vm2 = vcmask 195584   ;;  %vm504_vm4 = vcmask 293888  }
  0xfd   :  { %v750_v43 = vpack.c.bf16 %v532_v40, %v531_v39  ;;  %v228_v52 = vsel %vm225_vm1, %v226_v9, %v227_v49  ;;  %vm514_vm5 = vcmask 359424   ;;  %vm519_vm7 = vcmask 392192  }
  0xfe   :  { %v230_v53 = vsel %vm225_vm1, %v227_v49, %v229_v50 }
  0xff   :  { %751 = vmatprep.subr.bf16.mxu0 %v750_v43  ;;  %765 = vmatprep.subr.bf16.mxu1 %v750_v43  ;;  %v243_v9 = vsel %vm967_vm8, %v917_v3, %v230_v53  ;;  %vm524_vm8 = vcmask 424960  }
 0x100   :  { %389 = vrot.lane.b32.xlu0 %v298_v57, %s838_s27  ;;  %377 = vrot.lane.b32.xlu1 %v168_v55, %s836_s2  ;;  %v247_v42 = vmax.f32 %v917_v3, %v243_v9 }
 0x101   :  { %753 = vmatpush3.bf16.msra.mxu0 %v750_v43  ;;  %769 = vmatpush3.bf16.msra.mxu1 %v750_v43 }
 0x102   :  { %755 = vmatprep.subr.bf16.mxu0 %v754_v45  ;;  %766 = vmatprep.subr.bf16.mxu1 %v754_v45 }
 0x104   :  { %407 = vrot.lane.b32.xlu0 %v318_v58, %s838_s27  ;;  %433 = vrot.lane.b32.xlu1 %v168_v55, %s837_s3  ;;  %v254_v55 = vsel %vm249_vm3, %v251_v14, %v253_v51  ;;  %v255_v14 = vrot.slane %v926_v4, 1  ;;  %v231_v58 = vsel %vm225_vm1, %v229_v50, %v223_v8  ;;  %v474_v8 = vpop.permute.xlu0 %473  ;;  %vm489_vm1 = vcmask 130048  }
 0x105   :  { %757 = vmatpush3.bf16.msra.mxu0 %v754_v45  ;;  %770 = vmatpush3.bf16.msra.mxu1 %v754_v45  ;;  %v248_v60 = vmax.f32 %v926_v4, %v231_v58 }
 0x106   :  { %760 = vmatprep.subr.msk.bf16.mxu0 %vm759_vm15, %v758_v48  ;;  %767 = vmatprep.subr.msk.bf16.mxu1 %vm759_vm15, %v758_v48  ;;  %v256_v41 = vsel %vm249_vm3, %v253_v51, %v255_v14  ;;  %v262_v54 = vsel %vm249_vm3, %v255_v14, %v250_v13  ;;  %vm499_vm3 = vcmask 261120  }
 0x107   :  { %v273_v59 = vmax.f32 %v247_v42, %v256_v41 }
 0x108   :  { %419 = vrot.lane.b32.xlu0 %v283_v56, %s839_s28  ;;  %367 = vrot.lane.b32.xlu1 %v286_v16, %s834_s12  ;;  %v246_v56 = vmax.f32 %v910_v2, %v228_v52 }
 0x109   :  { %763 = vmatpush3.bf16.msk.msra.mxu0 %vm759_vm15, %v758_v48  ;;  %771 = vmatpush3.bf16.msk.msra.mxu1 %vm759_vm15, %v758_v48 }
 0x10c   :  { %441 = vrot.lane.b32.xlu0 %v298_v57, %s840_s29  ;;  %393 = vrot.lane.b32.xlu1 %v302_v17, %s838_s27  ;;  %v268_v57 = vsel %vm971_vm9, %v910_v2, %v254_v55  ;;  %vm537_vm9 = vcmask 490496  }
 0x10d   :  { %v272_v38 = vmax.f32 %v246_v56, %v268_v57 }
 0x110   :  { %457 = vrot.lane.b32.xlu0 %v338_v61, %s841_s30  ;;  %395 = vrot.lane.b32.xlu1 %v312_v18, %s838_s27  ;;  %v270_v61 = vsel %vm959_vm6, %v926_v4, %v262_v54  ;;  %vm509_vm6 = vcmask 326656  }
 0x111   :  { %v274_v62 = vmax.f32 %v248_v60, %v270_v61 }
 0x114   :  { %361 = vrot.lane.b32.xlu0 %v292_v34, %s834_s12  ;;  %411 = vrot.lane.b32.xlu1 %v321_v20, %s838_s27 }
 0x118   :  { %405 = vrot.lane.b32.xlu0 %v331_v21, %s838_s27  ;;  %423 = vrot.lane.b32.xlu1 %v286_v16, %s839_s28 }
 0x11c   :  { %417 = vrot.lane.b32.xlu0 %v292_v34, %s839_s28  ;;  %445 = vrot.lane.b32.xlu1 %v302_v17, %s840_s29 }
 0x120   :  { %447 = vrot.lane.b32.xlu1 %v312_v18, %s840_s29  ;;  %365 = vrot.lane.b32.xlu0 %v1012_v24, %s834_s12 }
 0x124   :  { %461 = vrot.lane.b32.xlu1 %v1008_v23, %s841_s30  ;;  %391 = vrot.lane.b32.xlu0 %v1023_v28, %s838_s27 }
 0x128   :  { %463 = vrot.lane.b32.xlu1 %v356_v29, %s841_s30  ;;  %443 = vrot.lane.b32.xlu0 %v1023_v28, %s840_s29 }
 0x12c   :  { %409 = vrot.lane.b32.xlu1 %v333_v30, %s838_s27  ;;  %459 = vrot.lane.b32.xlu0 %v354_v32, %s841_s30 }
 0x130   :  { %421 = vrot.lane.b32.xlu1 %v1012_v24, %s839_s28  ;;  %475 = vrot.lane.b32.xlu0 %v272_v38, %s835_s0 }
 0x134   :  { %477 = vrot.lane.b32.xlu1 %v273_v59, %s835_s0 }
 0x138   :  { %479 = vrot.lane.b32.xlu1 %v274_v62, %s835_s0 }
 0x162   :  { %v376_v63 = vpop.permute.xlu0 %375 }
 0x166   :  { %v432_v13 = vpop.permute.xlu0 %431  ;;  %v364_v0 = vpop.permute.xlu1 %363 }
 0x167   :  { %v486_v40 = vsel %vm46_vm0, %v910_v2, %v364_v0 }
 0x168   :  { %v491_v44 = vsel %vm489_vm1, %v486_v40, %v376_v63 }
 0x16a   :  { %v374_v5 = vpop.permute.xlu0 %373  ;;  %v380_v6 = vpop.permute.xlu1 %379 }
 0x16e   :  { %v430_v7 = vpop.permute.xlu0 %429  ;;  %v1116_v10 = vpop.permute.xlu1 %435 }
 0x172   :  { %v390_v12 = vpop.permute.xlu0 %389  ;;  %v378_v15 = vpop.permute.xlu1 %377 }
 0x176   :  { %v408_v16 = vpop.permute.xlu0 %407  ;;  %v434_v17 = vpop.permute.xlu1 %433 }
 0x17a   :  { %v420_v33 = vpop.permute.xlu0 %419  ;;  %v368_v18 = vpop.permute.xlu1 %367 }
 0x17b   :  { %v488_v56 = vsel %vm46_vm0, %v926_v4, %v368_v18 }
 0x17c   :  { %v493_v14 = vsel %vm489_vm1, %v488_v56, %v380_v6 }
 0x17e   :  { %v442_v19 = vpop.permute.xlu0 %441  ;;  %v394_v20 = vpop.permute.xlu1 %393 }
 0x182   :  { %v458_v21 = vpop.permute.xlu0 %457  ;;  %v396_v22 = vpop.permute.xlu1 %395 }
 0x183   :  { %v498_v58 = vsel %vm494_vm2, %v493_v14, %v396_v22 }
 0x186   :  { %v362_v23 = vpop.permute.xlu0 %361  ;;  %v412_v24 = vpop.permute.xlu1 %411 }
 0x187   :  { %v485_v25 = vsel %vm46_vm0, %v905_v1, %v362_v23  ;;  %v503_v4 = vsel %vm499_vm3, %v498_v58, %v412_v24 }
 0x188   :  { %v490_v26 = vsel %vm489_vm1, %v485_v25, %v374_v5 }
 0x189   :  { %v495_v29 = vsel %vm494_vm2, %v490_v26, %v390_v12 }
 0x18a   :  { %v406_v27 = vpop.permute.xlu0 %405  ;;  %v424_v28 = vpop.permute.xlu1 %423 }
 0x18b   :  { %v500_v30 = vsel %vm499_vm3, %v495_v29, %v406_v27  ;;  %v508_v61 = vsel %vm504_vm4, %v503_v4, %v424_v28 }
 0x18c   :  { %v513_v0 = vsel %vm509_vm6, %v508_v61, %v1116_v10  ;;  %v698_v10 = vld [vmem:[%s1190_s6] ss:$0 sm:$0xff] }
 0x18e   :  { %v418_v31 = vpop.permute.xlu0 %417  ;;  %v446_v32 = vpop.permute.xlu1 %445 }
 0x18f   :  { %v505_v34 = vsel %vm504_vm4, %v500_v30, %v418_v31 }
 0x190   :  { %v510_v1 = vsel %vm509_vm6, %v505_v34, %v430_v7 }
 0x191   :  { %v515_v35 = vsel %vm514_vm5, %v510_v1, %v442_v19 }
 0x192   :  { %v448_v36 = vpop.permute.xlu1 %447  ;;  %v366_v37 = vpop.permute.xlu0 %365  ;;  %v520_v39 = vsel %vm519_vm7, %v515_v35, %v458_v21 }
 0x193   :  { %v525_v43 = vsel %vm524_vm8, %v520_v39, %v474_v8  ;;  %v487_v50 = vsel %vm46_vm0, %v917_v3, %v366_v37  ;;  %v518_v5 = vsel %vm514_vm5, %v513_v0, %v448_v36 }
 0x194   :  { %740 = vmatprep.mubr.msk.f32.mxu0 %vm537_vm9, %v525_v43  ;;  %v492_v2 = vsel %vm489_vm1, %v487_v50, %v378_v15  ;;  %v697_v15 = vld [vmem:[%s1189_s5] ss:$0 sm:$0xff]  ;;  %s843_s5 = smov [#allocation5]  }
 0x195   :  { %v497_v57 = vsel %vm494_vm2, %v492_v2, %v394_v20  ;;  %s674_s14 = sshll.u32 %s843_s5, 4  ;;  %s675_s14 = int_to_ptr.vmem [resolvable:$true] %s674_s14 }
 0x196   :  { %v462_v11 = vpop.permute.xlu1 %461  ;;  %v392_v45 = vpop.permute.xlu0 %391  ;;  %s806_s6 = scalar_lea.vmem %s675_s14, 512  ;;  %p811_p9 = scmp.lt.s32.totalorder %s675_s14, %s675_s14 }
 0x197   :  { %v496_v46 = vsel %vm494_vm2, %v491_v44, %v392_v45  ;;  %p807_p8 = scmp.ne.s32.totalorder %s675_s14, %s806_s6  ;;  %p812_p10 = scmp.lt.s32.totalorder %s806_s6, %s806_s6 }
 0x198   :  { %v501_v47 = vsel %vm499_vm3, %v496_v46, %v408_v16 }
 0x199   :  { %v506_v51 = vsel %vm504_vm4, %v501_v47, %v420_v33  ;;  %p813_p11 = por %p812_p10, %p811_p9 }
 0x19a   :  { %v464_v48 = vpop.permute.xlu1 %463  ;;  %v444_v49 = vpop.permute.xlu0 %443  ;;  %v511_v52 = vsel %vm509_vm6, %v506_v51, %v432_v13 }
 0x19b   :  { %v516_v9 = vsel %vm514_vm5, %v511_v52, %v444_v49  ;;  %v523_v6 = vsel %vm519_vm7, %v518_v5, %v464_v48  ;;  %p814_p12 = pnand %p813_p11, %p807_p8 }
 0x19e   :  { %v410_v53 = vpop.permute.xlu1 %409  ;;  %v460_v55 = vpop.permute.xlu0 %459 }
 0x19f   :  { %v502_v42 = vsel %vm499_vm3, %v497_v57, %v410_v53  ;;  %v521_v3 = vsel %vm519_vm7, %v516_v9, %v460_v55 }
 0x1a2   :  { %v422_v38 = vpop.permute.xlu1 %421  ;;  %v476_v41 = vpop.permute.xlu0 %475 }
 0x1a3   :  { %v507_v54 = vsel %vm504_vm4, %v502_v42, %v422_v38  ;;  %v526_v59 = vsel %vm524_vm8, %v521_v3, %v476_v41 }
 0x1a4   :  { %v512_v60 = vsel %vm509_vm6, %v507_v54, %v434_v17  ;;  %741 = vmatmul.mubr.msk.f32.vlgmr.msra.gmra.mrb[4].mxu0 %vm537_vm9, %v526_v59 }
 0x1a5   :  { %v517_v62 = vsel %vm514_vm5, %v512_v60, %v446_v32 }
 0x1a6   :  { %v478_v8 = vpop.permute.xlu1 %477  ;;  %v522_v63 = vsel %vm519_vm7, %v517_v62, %v462_v11 }
 0x1a7   :  { %v527_v13 = vsel %vm524_vm8, %v522_v63, %v478_v8 }
 0x1a8   :  { %743 = vmatprep.mubr.msk.f32.mxu1 %vm537_vm9, %v527_v13 }
 0x1aa   :  { %v480_v7 = vpop.permute.xlu1 %479 }
 0x1ab   :  { %v528_v12 = vsel %vm524_vm8, %v523_v6, %v480_v7 }
 0x1ac   :  { %744 = vmatmul.mubr.msk.f32.vlgmr.msra.gmra.mrb[0].mxu1 %vm537_vm9, %v528_v12 }
 0x277   :  { %v742_v16 = vpop.f32.mrb[4].mxu0 }
 0x278   :  { %v647_v17 = vmul.f32 %v742_v16, %v697_v15  ;;  %v620_v33 = vpop.f32.mrb[5].mxu0 }
 0x279   :  { %v646_v18 = vmul.f32 %v697_v15, %v620_v33 }
 0x27a   :  { %v658_v19 = vadd.f32 %v698_v10, %v647_v17 }
 0x27b   :  { %v657_v20 = vadd.f32 %v698_v10, %v646_v18 }
 0x27c   :  { %v662_v21 = vmax.f32 %v658_v19, 0.0 }
 0x27d   :  { %v661_v22 = vmax.f32 %v657_v20, 0.0 }
 0x27e   :  { %666 = vst [vmem:[#allocation5 + $0x8] sm:$0xff] %v662_v21 }
 0x27f   :  { %665 = vst [vmem:[#allocation5] sm:$0xff] %v661_v22  ;;  %v745_v23 = vpop.f32.mrb[0].mxu1 }
 0x280   :  { %v649_v24 = vmul.f32 %v745_v23, %v697_v15  ;;  %v630_v25 = vpop.f32.mrb[1].mxu1 }
 0x281   :  { %v648_v26 = vmul.f32 %v697_v15, %v630_v25 }
 0x282   :  { %v660_v27 = vadd.f32 %v698_v10, %v649_v24 }
 0x283   :  { %v659_v28 = vadd.f32 %v698_v10, %v648_v26 }
 0x284   :  { %v664_v29 = vmax.f32 %v660_v27, 0.0 }
 0x285   :  { %v663_v30 = vmax.f32 %v659_v28, 0.0 }
 0x286   :  { %668 = vst [vmem:[#allocation5 + $0x18] sm:$0xff] %v664_v29 }
 0x287   :  { %667 = vst [vmem:[#allocation5 + $0x10] sm:$0xff] %v663_v30 }
 0x288   :  { %817 = shalt.err (!%p814_p12)
}
 0x289   :  { %s818_s17 = scalar_lea.hbm %s1191_s7, 512 }
 0x28a   :  { %p819_p13 = scmp.ne.s32.totalorder %s1191_s7, %s818_s17  ;;  %p822_p0 = scmp.lt.u32.totalorder %s818_s17, %s1191_s7 }
 0x28c   :  { %p824_p1 = pnand %p822_p0, %p819_p13 }
 0x28e   :  { %827 = shalt.err (!%p824_p1)
}
 0x28f   :  { %680 = dma.vmem_to_hbm [thread:$0]  %s675_s14, 512, %s1191_s7, [#allocation4], %s833_s11, %s833_s11, %s834_s12  }
 0x290   :  { %830 = dma.done.wait [#allocation4], 512  }
 0x291   :  { %831 = vsyncadd [#allocation4], 4294966784 }
 0x292   :  { %684 = vsyncpa [#allocation3], 1 }
 0x293   :  { %685 = vsyncpa [#allocation4], 1 }

</bundles_post_ra>
